<compile_context>
chip_gen: v7x
topology: tpu7x:2x2x1
jax: 0.10.0
libtpu: 0.0.40
codegen_flags: <defaults>
</compile_context>

<pallas_src>
import math
import jax
import jax.numpy as jnp
from jax import lax
from jax.experimental import pallas as pl
from jax.experimental.pallas import tpu as pltpu

B, S, D, H = 2, 8, 128, 2
HEAD_DIM = D // H            # 64
SCALE = 1.0 / math.sqrt(HEAD_DIM)


# ----------------------------------------------------------------------------
# Single fused kernel: QKV projection + per-(batch, head) attention + merge
# ----------------------------------------------------------------------------
def fused_attn_kernel(x_ref, w_ref, b_ref, mask_ref, o_ref):
    x = x_ref[...]                                              # (B*S, D)

    # One MXU matmul for all of Q, K, V: (B*S, D) @ (D, 3D) -> (B*S, 3D)
    qkv = jnp.dot(x, w_ref[...],
                  preferred_element_type=jnp.float32) + b_ref[...]

    # Additive mask, exactly as in the PyTorch forward: (1 - mask) * float32_min
    madd = (1.0 - mask_ref[...]) * jnp.finfo(jnp.float32).min   # (B, S)

    out_rows = []
    for b in range(B):                                          # unrolled (tiny)
        m_row = madd[b:b + 1, :]                                # (1, S) -> bcast over q
        r0 = b * S
        head_outs = []
        for h in range(H):
            c0 = h * HEAD_DIM
            q = qkv[r0:r0 + S, c0:c0 + HEAD_DIM]                # (S, d)
            k = qkv[r0:r0 + S, D + c0:D + c0 + HEAD_DIM]        # (S, d)
            v = qkv[r0:r0 + S, 2 * D + c0:2 * D + c0 + HEAD_DIM]

            # scores = q @ k^T without materializing k.T (contract last axes)
            s = lax.dot_general(q, k, (((1,), (1,)), ((), ())),
                                preferred_element_type=jnp.float32) * SCALE
            s = s + m_row                                       # mask over key axis
            s = s - jnp.max(s, axis=-1, keepdims=True)          # stable softmax
            p = jnp.exp(s)
            p = p * pl.reciprocal(jnp.sum(p, axis=-1, keepdims=True),
                                  approx=True)
            head_outs.append(jnp.dot(p, v,
                                     preferred_element_type=jnp.float32))
        out_rows.append(jnp.concatenate(head_outs, axis=1))     # (S, D) lane-dense

    # Single lane-dense (B*S, 128) store of the merged-head result.
    o_ref[...] = jnp.concatenate(out_rows, axis=0).astype(o_ref.dtype)


# ----------------------------------------------------------------------------
# Wrapper
# ----------------------------------------------------------------------------
def bert_self_attention(hidden, mask, wq, bq, wk, bk, wv, bv):
    b, s, d = hidden.shape
    assert (b, s, d) == (B, S, D)

    # Pre-transpose + fuse projection weights outside the kernel:
    # PyTorch Linear weight is (out, in); we want x @ W_fused, W_fused (in, 3*out).
    w_qkv = jnp.concatenate([wq.T, wk.T, wv.T], axis=1)         # (D, 3D)
    b_qkv = jnp.concatenate([bq.reshape(1, d), bk.reshape(1, d),
                             bv.reshape(1, d)], axis=1)         # (1, 3D)

    x = hidden.reshape(b * s, d)
    mask_f = mask.astype(jnp.float32)

    def full(shp):
        return pl.BlockSpec(shp, lambda: tuple(0 for _ in shp))

    out2d = pl.pallas_call(
        fused_attn_kernel,
        out_shape=jax.ShapeDtypeStruct((b * s, d), jnp.float32),
        in_specs=[full((b * s, d)),        # x
                  full((d, 3 * d)),        # fused weight
                  full((1, 3 * d)),        # fused bias
                  full((b, s))],           # mask
        out_specs=full((b * s, d)),
    )(x, w_qkv, b_qkv, mask_f)

    return out2d.reshape(b, s, d)


# ----------------------------------------------------------------------------
# Pure-JAX reference (for an in-script sanity check)
# ----------------------------------------------------------------------------
def reference(hidden, mask, wq, bq, wk, bk, wv, bv):
    b, s, d = hidden.shape
    x = hidden.reshape(b * s, d)
    q = (x @ wq.T + bq.reshape(1, d)).reshape(b, s, H, HEAD_DIM).transpose(0, 2, 1, 3)
    k = (x @ wk.T + bk.reshape(1, d)).reshape(b, s, H, HEAD_DIM).transpose(0, 2, 1, 3)
    v = (x @ wv.T + bv.reshape(1, d)).reshape(b, s, H, HEAD_DIM).transpose(0, 2, 1, 3)
    madd = ((1.0 - mask.astype(jnp.float32)) * jnp.finfo(jnp.float32).min
            ).reshape(b, 1, 1, s)
    sc = jnp.einsum("bhqd,bhkd->bhqk", q, k) * SCALE + madd
    p = jax.nn.softmax(sc, axis=-1)
    ctx = jnp.einsum("bhqk,bhkd->bhqd", p, v)
    return ctx.transpose(0, 2, 1, 3).reshape(b, s, d)


if __name__ == "__main__":
    key = jax.random.PRNGKey(0)
    k_h, k_q, k_k, k_v, _ = jax.random.split(key, 5)

    # Deterministic parameter init (PyTorch Linear weight layout: (out, in)).
    wq = jax.random.normal(k_q, (D, D), jnp.float32) * 0.02
    wk = jax.random.normal(k_k, (D, D), jnp.float32) * 0.02
    wv = jax.random.normal(k_v, (D, D), jnp.float32) * 0.02
    # Biases are explicitly zeroed in the module's __init__.
    bq = jnp.zeros((1, D), jnp.float32)
    bk = jnp.zeros((1, D), jnp.float32)
    bv = jnp.zeros((1, D), jnp.float32)
    # NOTE: self.linear and self.ln are defined in __init__ but unused in forward.

    hidden = jax.random.normal(k_h, (B, S, D), jnp.float32)
    mask = jnp.ones((B, S), jnp.float32).at[1, -2:].set(0.0)    # mask last 2 keys of batch 1

    out = bert_self_attention(hidden, mask, wq, bq, wk, bk, wv, bv)
    jax.block_until_ready(out)
    assert out.shape == (B, S, D) and out.dtype == jnp.float32

    ref = reference(hidden, mask, wq, bq, wk, bk, wv, bv)
    assert jnp.allclose(out, ref, rtol=5e-2, atol=5e-2)

    print("KERNEL_OK")
</pallas_src>

<mosaic_0001>
module attributes {stable_mosaic.version = 11 : i64} {
  func.func @fused_attn_kernel(%arg0: memref<16x128xf32, #tpu.memory_space<vmem>>, %arg1: memref<128x384xf32, #tpu.memory_space<vmem>>, %arg2: memref<1x384xf32, #tpu.memory_space<vmem>>, %arg3: memref<2x8xf32, #tpu.memory_space<vmem>>, %arg4: memref<16x128xf32, #tpu.memory_space<vmem>>) attributes {dimension_semantics = [], scalar_prefetch = 0 : i64, scratch_operands = 0 : i64, tpu.core_type = #tpu.core_type<tc>} {
    %c0 = arith.constant 0 : index
    %c0_0 = arith.constant 0 : index
    %0 = vector.load %arg0[%c0, %c0_0] : memref<16x128xf32, #tpu.memory_space<vmem>>, vector<16x128xf32>
    %c0_1 = arith.constant 0 : index
    %c0_2 = arith.constant 0 : index
    %1 = vector.load %arg1[%c0_1, %c0_2] : memref<128x384xf32, #tpu.memory_space<vmem>>, vector<128x384xf32>
    %cst = arith.constant dense<0.000000e+00> : vector<16x384xf32>
    %2 = tpu.matmul %0, %1, %cst {dimension_numbers = #tpu.dot_dimension_numbers<[1], [0], [0], [1], [0, 0, 1, 1], [], []>} : vector<16x128xf32>, vector<128x384xf32>, vector<16x384xf32> -> vector<16x384xf32>
    %c0_3 = arith.constant 0 : index
    %c0_4 = arith.constant 0 : index
    %3 = vector.load %arg2[%c0_3, %c0_4] : memref<1x384xf32, #tpu.memory_space<vmem>>, vector<1x384xf32>
    %4 = vector.broadcast %3 : vector<1x384xf32> to vector<16x384xf32>
    %5 = arith.addf %2, %4 : vector<16x384xf32>
    %c0_5 = arith.constant 0 : index
    %c0_6 = arith.constant 0 : index
    %6 = vector.load %arg3[%c0_5, %c0_6] : memref<2x8xf32, #tpu.memory_space<vmem>>, vector<2x8xf32>
    %cst_7 = arith.constant 1.000000e+00 : f32
    %7 = vector.broadcast %cst_7 : f32 to vector<2x8xf32>
    %8 = arith.subf %7, %6 : vector<2x8xf32>
    %cst_8 = arith.constant -3.40282347E+38 : f32
    %9 = vector.broadcast %cst_8 : f32 to vector<2x8xf32>
    %10 = arith.mulf %8, %9 : vector<2x8xf32>
    %11 = vector.extract_strided_slice %10 {offsets = [0, 0], sizes = [1, 8], strides = [1, 1]} : vector<2x8xf32> to vector<1x8xf32>
    %12 = vector.extract_strided_slice %5 {offsets = [0, 0], sizes = [8, 64], strides = [1, 1]} : vector<16x384xf32> to vector<8x64xf32>
    %13 = vector.extract_strided_slice %5 {offsets = [0, 128], sizes = [8, 64], strides = [1, 1]} : vector<16x384xf32> to vector<8x64xf32>
    %14 = vector.extract_strided_slice %5 {offsets = [0, 256], sizes = [8, 64], strides = [1, 1]} : vector<16x384xf32> to vector<8x64xf32>
    %cst_9 = arith.constant dense<0.000000e+00> : vector<8x8xf32>
    %15 = tpu.matmul %12, %13, %cst_9 {dimension_numbers = #tpu.dot_dimension_numbers<[1], [1], [0], [0], [0, 0, 1, 0], [], []>} : vector<8x64xf32>, vector<8x64xf32>, vector<8x8xf32> -> vector<8x8xf32>
    %cst_10 = arith.constant 1.250000e-01 : f32
    %16 = vector.broadcast %cst_10 : f32 to vector<8x8xf32>
    %17 = arith.mulf %15, %16 : vector<8x8xf32>
    %18 = vector.broadcast %11 : vector<1x8xf32> to vector<8x8xf32>
    %19 = arith.addf %17, %18 : vector<8x8xf32>
    %cst_11 = arith.constant dense<0xFF800000> : vector<8xf32>
    %20 = vector.multi_reduction <maximumf>, %19, %cst_11 [1] : vector<8x8xf32> to vector<8xf32>
    %21 = vector.shape_cast %20 : vector<8xf32> to vector<8x1xf32>
    %22 = vector.broadcast %21 : vector<8x1xf32> to vector<8x8xf32>
    %23 = arith.subf %19, %22 : vector<8x8xf32>
    %24 = math.exp %23 : vector<8x8xf32>
    %cst_12 = arith.constant dense<0.000000e+00> : vector<8xf32>
    %25 = vector.multi_reduction <add>, %24, %cst_12 [1] : vector<8x8xf32> to vector<8xf32>
    %26 = vector.shape_cast %25 : vector<8xf32> to vector<8x1xf32>
    %27 = tpu.reciprocal %26 {approx = true} : vector<8x1xf32> -> vector<8x1xf32>
    %28 = vector.broadcast %27 : vector<8x1xf32> to vector<8x8xf32>
    %29 = arith.mulf %24, %28 : vector<8x8xf32>
    %cst_13 = arith.constant dense<0.000000e+00> : vector<8x64xf32>
    %30 = tpu.matmul %29, %14, %cst_13 {dimension_numbers = #tpu.dot_dimension_numbers<[1], [0], [0], [1], [0, 0, 1, 1], [], []>} : vector<8x8xf32>, vector<8x64xf32>, vector<8x64xf32> -> vector<8x64xf32>
    %31 = vector.extract_strided_slice %5 {offsets = [0, 64], sizes = [8, 64], strides = [1, 1]} : vector<16x384xf32> to vector<8x64xf32>
    %32 = vector.extract_strided_slice %5 {offsets = [0, 192], sizes = [8, 64], strides = [1, 1]} : vector<16x384xf32> to vector<8x64xf32>
    %33 = vector.extract_strided_slice %5 {offsets = [0, 320], sizes = [8, 64], strides = [1, 1]} : vector<16x384xf32> to vector<8x64xf32>
    %cst_14 = arith.constant dense<0.000000e+00> : vector<8x8xf32>
    %34 = tpu.matmul %31, %32, %cst_14 {dimension_numbers = #tpu.dot_dimension_numbers<[1], [1], [0], [0], [0, 0, 1, 0], [], []>} : vector<8x64xf32>, vector<8x64xf32>, vector<8x8xf32> -> vector<8x8xf32>
    %cst_15 = arith.constant 1.250000e-01 : f32
    %35 = vector.broadcast %cst_15 : f32 to vector<8x8xf32>
    %36 = arith.mulf %34, %35 : vector<8x8xf32>
    %37 = vector.broadcast %11 : vector<1x8xf32> to vector<8x8xf32>
    %38 = arith.addf %36, %37 : vector<8x8xf32>
    %cst_16 = arith.constant dense<0xFF800000> : vector<8xf32>
    %39 = vector.multi_reduction <maximumf>, %38, %cst_16 [1] : vector<8x8xf32> to vector<8xf32>
    %40 = vector.shape_cast %39 : vector<8xf32> to vector<8x1xf32>
    %41 = vector.broadcast %40 : vector<8x1xf32> to vector<8x8xf32>
    %42 = arith.subf %38, %41 : vector<8x8xf32>
    %43 = math.exp %42 : vector<8x8xf32>
    %cst_17 = arith.constant dense<0.000000e+00> : vector<8xf32>
    %44 = vector.multi_reduction <add>, %43, %cst_17 [1] : vector<8x8xf32> to vector<8xf32>
    %45 = vector.shape_cast %44 : vector<8xf32> to vector<8x1xf32>
    %46 = tpu.reciprocal %45 {approx = true} : vector<8x1xf32> -> vector<8x1xf32>
    %47 = vector.broadcast %46 : vector<8x1xf32> to vector<8x8xf32>
    %48 = arith.mulf %43, %47 : vector<8x8xf32>
    %cst_18 = arith.constant dense<0.000000e+00> : vector<8x64xf32>
    %49 = tpu.matmul %48, %33, %cst_18 {dimension_numbers = #tpu.dot_dimension_numbers<[1], [0], [0], [1], [0, 0, 1, 1], [], []>} : vector<8x8xf32>, vector<8x64xf32>, vector<8x64xf32> -> vector<8x64xf32>
    %50 = tpu.concatenate %30, %49 in 1 : vector<8x64xf32>, vector<8x64xf32> -> vector<8x128xf32>
    %51 = vector.extract_strided_slice %10 {offsets = [1, 0], sizes = [1, 8], strides = [1, 1]} : vector<2x8xf32> to vector<1x8xf32>
    %52 = vector.extract_strided_slice %5 {offsets = [8, 0], sizes = [8, 64], strides = [1, 1]} : vector<16x384xf32> to vector<8x64xf32>
    %53 = vector.extract_strided_slice %5 {offsets = [8, 128], sizes = [8, 64], strides = [1, 1]} : vector<16x384xf32> to vector<8x64xf32>
    %54 = vector.extract_strided_slice %5 {offsets = [8, 256], sizes = [8, 64], strides = [1, 1]} : vector<16x384xf32> to vector<8x64xf32>
    %cst_19 = arith.constant dense<0.000000e+00> : vector<8x8xf32>
    %55 = tpu.matmul %52, %53, %cst_19 {dimension_numbers = #tpu.dot_dimension_numbers<[1], [1], [0], [0], [0, 0, 1, 0], [], []>} : vector<8x64xf32>, vector<8x64xf32>, vector<8x8xf32> -> vector<8x8xf32>
    %cst_20 = arith.constant 1.250000e-01 : f32
    %56 = vector.broadcast %cst_20 : f32 to vector<8x8xf32>
    %57 = arith.mulf %55, %56 : vector<8x8xf32>
    %58 = vector.broadcast %51 : vector<1x8xf32> to vector<8x8xf32>
    %59 = arith.addf %57, %58 : vector<8x8xf32>
    %cst_21 = arith.constant dense<0xFF800000> : vector<8xf32>
    %60 = vector.multi_reduction <maximumf>, %59, %cst_21 [1] : vector<8x8xf32> to vector<8xf32>
    %61 = vector.shape_cast %60 : vector<8xf32> to vector<8x1xf32>
    %62 = vector.broadcast %61 : vector<8x1xf32> to vector<8x8xf32>
    %63 = arith.subf %59, %62 : vector<8x8xf32>
    %64 = math.exp %63 : vector<8x8xf32>
    %cst_22 = arith.constant dense<0.000000e+00> : vector<8xf32>
    %65 = vector.multi_reduction <add>, %64, %cst_22 [1] : vector<8x8xf32> to vector<8xf32>
    %66 = vector.shape_cast %65 : vector<8xf32> to vector<8x1xf32>
    %67 = tpu.reciprocal %66 {approx = true} : vector<8x1xf32> -> vector<8x1xf32>
    %68 = vector.broadcast %67 : vector<8x1xf32> to vector<8x8xf32>
    %69 = arith.mulf %64, %68 : vector<8x8xf32>
    %cst_23 = arith.constant dense<0.000000e+00> : vector<8x64xf32>
    %70 = tpu.matmul %69, %54, %cst_23 {dimension_numbers = #tpu.dot_dimension_numbers<[1], [0], [0], [1], [0, 0, 1, 1], [], []>} : vector<8x8xf32>, vector<8x64xf32>, vector<8x64xf32> -> vector<8x64xf32>
    %71 = vector.extract_strided_slice %5 {offsets = [8, 64], sizes = [8, 64], strides = [1, 1]} : vector<16x384xf32> to vector<8x64xf32>
    %72 = vector.extract_strided_slice %5 {offsets = [8, 192], sizes = [8, 64], strides = [1, 1]} : vector<16x384xf32> to vector<8x64xf32>
    %73 = vector.extract_strided_slice %5 {offsets = [8, 320], sizes = [8, 64], strides = [1, 1]} : vector<16x384xf32> to vector<8x64xf32>
    %cst_24 = arith.constant dense<0.000000e+00> : vector<8x8xf32>
    %74 = tpu.matmul %71, %72, %cst_24 {dimension_numbers = #tpu.dot_dimension_numbers<[1], [1], [0], [0], [0, 0, 1, 0], [], []>} : vector<8x64xf32>, vector<8x64xf32>, vector<8x8xf32> -> vector<8x8xf32>
    %cst_25 = arith.constant 1.250000e-01 : f32
    %75 = vector.broadcast %cst_25 : f32 to vector<8x8xf32>
    %76 = arith.mulf %74, %75 : vector<8x8xf32>
    %77 = vector.broadcast %51 : vector<1x8xf32> to vector<8x8xf32>
    %78 = arith.addf %76, %77 : vector<8x8xf32>
    %cst_26 = arith.constant dense<0xFF800000> : vector<8xf32>
    %79 = vector.multi_reduction <maximumf>, %78, %cst_26 [1] : vector<8x8xf32> to vector<8xf32>
    %80 = vector.shape_cast %79 : vector<8xf32> to vector<8x1xf32>
    %81 = vector.broadcast %80 : vector<8x1xf32> to vector<8x8xf32>
    %82 = arith.subf %78, %81 : vector<8x8xf32>
    %83 = math.exp %82 : vector<8x8xf32>
    %cst_27 = arith.constant dense<0.000000e+00> : vector<8xf32>
    %84 = vector.multi_reduction <add>, %83, %cst_27 [1] : vector<8x8xf32> to vector<8xf32>
    %85 = vector.shape_cast %84 : vector<8xf32> to vector<8x1xf32>
    %86 = tpu.reciprocal %85 {approx = true} : vector<8x1xf32> -> vector<8x1xf32>
    %87 = vector.broadcast %86 : vector<8x1xf32> to vector<8x8xf32>
    %88 = arith.mulf %83, %87 : vector<8x8xf32>
    %cst_28 = arith.constant dense<0.000000e+00> : vector<8x64xf32>
    %89 = tpu.matmul %88, %73, %cst_28 {dimension_numbers = #tpu.dot_dimension_numbers<[1], [0], [0], [1], [0, 0, 1, 1], [], []>} : vector<8x8xf32>, vector<8x64xf32>, vector<8x64xf32> -> vector<8x64xf32>
    %90 = tpu.concatenate %70, %89 in 1 : vector<8x64xf32>, vector<8x64xf32> -> vector<8x128xf32>
    %91 = tpu.concatenate %50, %90 in 0 : vector<8x128xf32>, vector<8x128xf32> -> vector<16x128xf32>
    %c0_29 = arith.constant 0 : index
    %c0_30 = arith.constant 0 : index
    %92 = vector.load %arg4[%c0_29, %c0_30] : memref<16x128xf32, #tpu.memory_space<vmem>>, vector<16x128xf32>
    tpu.vector_store %arg4[%c0_29, %c0_30], %91 {strides = array<i32>} : memref<16x128xf32, #tpu.memory_space<vmem>>, vector<16x128xf32>,
    return
  }
}

</mosaic_0001>

<bundles_post_ra>
// kernel: tpu_custom_call.1
= control target key start
LH: loop header
LB: loop body
LE: loop exit
PB: predicated region body
PF: predicated region fallthrough
CT: control target
= control target key end

     0   :  { %9 = vsyncpa [#allocation3], 0  ;;  %s1402_s0 = inlined_call_operand.hbm [shape: f32[16,128], index: 0, kind: input, shape index: {}]   ;;  %s1403_s1 = inlined_call_operand.hbm [shape: f32[128,384], index: 1, kind: input, shape index: {}]   ;;  %s1404_s2 = inlined_call_operand.vmem [shape: f32[1,384], index: 2, kind: input, shape index: {}]   ;;  %s1405_s3 = inlined_call_operand.vmem [shape: f32[2,8], index: 3, kind: input, shape index: {}]   ;;  %s1406_s4 = inlined_call_operand.hbm [shape: f32[16,128], index: 4, kind: output, shape index: {}]  }
   0x1   :  { %10 = vsyncpa [#allocation6], 0 }
   0x2   :  { %11 = vsyncpa [#allocation4], 0  ;;  %s1251_s15 = smov [#allocation2]   ;;  %s1179_s19 = scalar_lea.hbm %s1402_s0, 256 }
   0x3   :  { %s17_s16 = sshll.u32 %s1251_s15, 4  ;;  %p1180_p0 = scmp.ne.s32.totalorder %s1402_s0, %s1179_s19  ;;  %s18_s16 = int_to_ptr.vmem [resolvable:$true] %s17_s16 }
   0x4   :  { %p1183_p1 = scmp.lt.u32.totalorder %s1179_s19, %s1402_s0 }
   0x6   :  { %p1185_p2 = pnand %p1183_p1, %p1180_p0 }
   0x8   :  { %1188 = shalt.err (!%p1185_p2)
}
   0x9   :  { %s1189_s24 = scalar_lea.vmem %s18_s16, 256  ;;  %p1194_p4 = scmp.lt.s32.totalorder %s18_s16, %s18_s16 }
   0xa   :  { %p1190_p3 = scmp.ne.s32.totalorder %s18_s16, %s1189_s24  ;;  %p1195_p5 = scmp.lt.s32.totalorder %s1189_s24, %s1189_s24 }
   0xc   :  { %p1196_p6 = por %p1195_p5, %p1194_p4 }
   0xe   :  { %p1197_p7 = pnand %p1196_p6, %p1190_p3 }
  0x10   :  { %1200 = shalt.err (!%p1197_p7)
}
  0x11   :  { %s1252_s25 = smov 128   ;;  %s1253_s26 = smov 8  }
  0x12   :  { %23 = dma.hbm_to_vmem [thread:$0]  %s1402_s0, 256, %s18_s16, [#allocation3], %s1252_s25, %s1252_s25, %s1253_s26  }
  0x13   :  { %s1254_s29 = smov [#allocation5]   ;;  %s1201_s7 = scalar_lea.hbm %s1403_s1, 6144 }
  0x14   :  { %s29_s30 = sshll.u32 %s1254_s29, 4  ;;  %p1202_p8 = scmp.ne.s32.totalorder %s1403_s1, %s1201_s7  ;;  %s30_s30 = int_to_ptr.vmem [resolvable:$true] %s29_s30 }
  0x15   :  { %p1205_p9 = scmp.lt.u32.totalorder %s1201_s7, %s1403_s1 }
  0x17   :  { %p1207_p10 = pnand %p1205_p9, %p1202_p8 }
  0x19   :  { %1210 = shalt.err (!%p1207_p10)
}
  0x1a   :  { %s1211_s12 = scalar_lea.vmem %s30_s30, 6144  ;;  %p1216_p12 = scmp.lt.s32.totalorder %s30_s30, %s30_s30 }
  0x1b   :  { %p1212_p11 = scmp.ne.s32.totalorder %s30_s30, %s1211_s12  ;;  %p1217_p13 = scmp.lt.s32.totalorder %s1211_s12, %s1211_s12 }
  0x1d   :  { %p1218_p0 = por %p1217_p13, %p1216_p12 }
  0x1f   :  { %p1219_p1 = pnand %p1218_p0, %p1212_p11 }
  0x21   :  { %1222 = shalt.err (!%p1219_p1)
}
  0x22   :  { %s1255_s0 = smov 384   ;;  %s1256_s13 = smov 24  }
  0x23   :  { %35 = dma.hbm_to_vmem [thread:$0]  %s1403_s1, 6144, %s30_s30, [#allocation6], %s1255_s0, %s1255_s0, %s1256_s13  }
  0x24   :  { %1245 = dma.done.wait [#allocation3], 256  }
  0x25   :  { %1246 = vsyncadd [#allocation3], 4294967040 }
  0x26   :  { %1247 = dma.done.wait [#allocation6], 6144  }
  0x27   :  { %1248 = vsyncadd [#allocation6], 4294961152  ;;  %v1257_v0 = vmov 0.0   ;;  %v49_v1 = vld [vmem:[#allocation5 + $0x8] sm:$0xff]  ;;  %v52_v2 = vld [vmem:[#allocation5 + $0x20] sm:$0xff]  ;;  %vm1258_vm0 = vmmov 0  }
  0x28   :  { %177 = vmatprep.mubr.f32.mxu0 %v1257_v0  ;;  %v48_v3 = vld [vmem:[#allocation5] sm:$0xff]  ;;  %v1089_v4 = vpack.c.bf16 %v52_v2, %v49_v1  ;;  %v51_v5 = vld [vmem:[#allocation5 + $0x18] sm:$0xff]  ;;  %v58_v7 = vld [vmem:[#allocation5 + $0x50] sm:$0xff]  ;;  %vm268_vm1 = vcmask 523264   ;;  %s1259_s17 = smov 64   ;;  %vm351_vm2 = vcmask 64512  }
  0x29   :  { %v55_v6 = vld [vmem:[#allocation5 + $0x38] sm:$0xff]  ;;  %v1091_v8 = vpack.c.bf16 %v51_v5, %v48_v3  ;;  %v54_v10 = vld [vmem:[#allocation5 + $0x30] sm:$0xff]  ;;  %v57_v11 = vld [vmem:[#allocation5 + $0x48] sm:$0xff] }
  0x2a   :  { %v1093_v9 = vpack.c.bf16 %v58_v7, %v55_v6  ;;  %v61_v12 = vld [vmem:[#allocation5 + $0x68] sm:$0xff]  ;;  %1090 = vmatprep.subr.bf16.mxu0 %v1089_v4  ;;  %v64_v13 = vld [vmem:[#allocation5 + $0x80] sm:$0xff]  ;;  %v1095_v14 = vpack.c.bf16 %v57_v11, %v54_v10  ;;  %v63_v17 = vld [vmem:[#allocation5 + $0x78] sm:$0xff] }
  0x2b   :  { %1092 = vmatpush1.bf16.msra.mxu0 %v1091_v8  ;;  %v1097_v15 = vpack.c.bf16 %v64_v13, %v61_v12  ;;  %v60_v16 = vld [vmem:[#allocation5 + $0x60] sm:$0xff]  ;;  %v67_v18 = vld [vmem:[#allocation5 + $0x98] sm:$0xff]  ;;  %v70_v19 = vld [vmem:[#allocation5 + $0xb0] sm:$0xff]  ;;  %v98_v12 = vlaneseq }
  0x2c   :  { %1094 = vmatprep.subr.bf16.mxu0 %v1093_v9  ;;  %v1099_v20 = vpack.c.bf16 %v63_v17, %v60_v16  ;;  %v1101_v21 = vpack.c.bf16 %v70_v19, %v67_v18  ;;  %v66_v22 = vld [vmem:[#allocation5 + $0x90] sm:$0xff]  ;;  %v69_v23 = vld [vmem:[#allocation5 + $0xa8] sm:$0xff]  ;;  %v76_v25 = vld [vmem:[#allocation5 + $0xe0] sm:$0xff] }
  0x2d   :  { %v73_v24 = vld [vmem:[#allocation5 + $0xc8] sm:$0xff]  ;;  %v1314_v26 = vld [vmem:[#allocation2] sm:$0xff]  ;;  %v1103_v29 = vpack.c.bf16 %v69_v23, %v66_v22  ;;  %v72_v30 = vld [vmem:[#allocation5 + $0xc0] sm:$0xff]  ;;  %v99_v13 = vshrl.u32 %v98_v12, 7 }
  0x2e   :  { %v50_v27 = vld [vmem:[#allocation5 + $0x10] sm:$0xff]  ;;  %v53_v28 = vld [vmem:[#allocation5 + $0x28] sm:$0xff]  ;;  %1046 = vmatprep.mubr.f32.mxu1 %v1314_v26  ;;  %v56_v32 = vld [vmem:[#allocation5 + $0x40] sm:$0xff]  ;;  %v1105_v34 = vpack.c.bf16 %v76_v25, %v73_v24 }
  0x2f   :  { %1096 = vmatpush1.bf16.msra.mxu0 %v1095_v14  ;;  %v1121_v31 = vpack.c.bf16 %v53_v28, %v50_v27  ;;  %v59_v33 = vld [vmem:[#allocation5 + $0x58] sm:$0xff]  ;;  %v62_v37 = vld [vmem:[#allocation5 + $0x70] sm:$0xff]  ;;  %v65_v38 = vld [vmem:[#allocation5 + $0x88] sm:$0xff]  ;;  %v104_v14 = vsub.s32 1, %v99_v13  ;;  %v100_v16 = vsub.s32 0, %v99_v13  ;;  %v108_v23 = vsub.s32 2, %v99_v13 }
  0x30   :  { %1098 = vmatprep.subr.bf16.mxu0 %v1097_v15  ;;  %v75_v35 = vld [vmem:[#allocation5 + $0xd8] sm:$0xff]  ;;  %v1125_v36 = vpack.c.bf16 %v59_v33, %v56_v32  ;;  %v82_v40 = vld [vmem:[#allocation5 + $0x110] sm:$0xff]  ;;  %v1129_v43 = vpack.c.bf16 %v65_v38, %v62_v37  ;;  %v81_v45 = vld [vmem:[#allocation5 + $0x108] sm:$0xff] }
  0x31   :  { %v79_v39 = vld [vmem:[#allocation5 + $0xf8] sm:$0xff]  ;;  %1122 = vmatprep.subr.bf16.mxu1 %v1121_v31  ;;  %v1107_v41 = vpack.c.bf16 %v75_v35, %v72_v30  ;;  %v78_v42 = vld [vmem:[#allocation5 + $0xf0] sm:$0xff]  ;;  %v68_v46 = vld [vmem:[#allocation5 + $0xa0] sm:$0xff] }
  0x32   :  { %1124 = vmatpush3.bf16.msra.mxu1 %v1121_v31  ;;  %v1109_v44 = vpack.c.bf16 %v82_v40, %v79_v39  ;;  %v71_v47 = vld [vmem:[#allocation5 + $0xb8] sm:$0xff]  ;;  %v85_v48 = vld [vmem:[#allocation5 + $0x128] sm:$0xff]  ;;  %v88_v49 = vld [vmem:[#allocation5 + $0x140] sm:$0xff]  ;;  %v1111_v50 = vpack.c.bf16 %v81_v45, %v78_v42 }
  0x33   :  { %1100 = vmatpush1.bf16.msra.mxu0 %v1099_v20  ;;  %1126 = vmatprep.subr.bf16.mxu1 %v1125_v36  ;;  %v84_v51 = vld [vmem:[#allocation5 + $0x120] sm:$0xff]  ;;  %v1133_v52 = vpack.c.bf16 %v71_v47, %v68_v46  ;;  %v1113_v53 = vpack.c.bf16 %v88_v49, %v85_v48  ;;  %v87_v54 = vld [vmem:[#allocation5 + $0x138] sm:$0xff]  ;;  %v74_v55 = vld [vmem:[#allocation5 + $0xd0] sm:$0xff] }
  0x34   :  { %1102 = vmatprep.subr.bf16.mxu0 %v1101_v21  ;;  %v77_v56 = vld [vmem:[#allocation5 + $0xe8] sm:$0xff]  ;;  %v91_v57 = vld [vmem:[#allocation5 + $0x158] sm:$0xff]  ;;  %v94_v58 = vld [vmem:[#allocation5 + $0x170] sm:$0xff]  ;;  %v1115_v59 = vpack.c.bf16 %v87_v54, %v84_v51 }
  0x35   :  { %v90_v60 = vld [vmem:[#allocation5 + $0x150] sm:$0xff]  ;;  %v1137_v61 = vpack.c.bf16 %v77_v56, %v74_v55  ;;  %v1117_v62 = vpack.c.bf16 %v94_v58, %v91_v57  ;;  %v93_v63 = vld [vmem:[#allocation5 + $0x168] sm:$0xff]  ;;  %v80_v1 = vld [vmem:[#allocation5 + $0x100] sm:$0xff] }
  0x36   :  { %1128 = vmatpush3.bf16.msra.mxu1 %v1125_v36  ;;  %v83_v2 = vld [vmem:[#allocation5 + $0x118] sm:$0xff]  ;;  %v1119_v3 = vpack.c.bf16 %v93_v63, %v90_v60  ;;  %v86_v5 = vld [vmem:[#allocation5 + $0x130] sm:$0xff]  ;;  %v89_v6 = vld [vmem:[#allocation5 + $0x148] sm:$0xff] }
  0x37   :  { %1104 = vmatpush1.bf16.msra.mxu0 %v1103_v29  ;;  %1130 = vmatprep.subr.bf16.mxu1 %v1129_v43  ;;  %v1141_v4 = vpack.c.bf16 %v83_v2, %v80_v1  ;;  %v1145_v7 = vpack.c.bf16 %v89_v6, %v86_v5  ;;  %v92_v8 = vld [vmem:[#allocation5 + $0x160] sm:$0xff]  ;;  %v95_v9 = vld [vmem:[#allocation5 + $0x178] sm:$0xff]  ;;  %v96_v15 = vld [vmem:[%s1404_s2] sm:$0x7] }
  0x38   :  { %1106 = vmatprep.subr.bf16.mxu0 %v1105_v34  ;;  %v47_v10 = vld [vmem:[#allocation2 + $0x8] sm:$0xff]  ;;  %v1149_v11 = vpack.c.bf16 %v95_v9, %v92_v8  ;;  %v105_v17 = vrot.slane %v96_v15, %v104_v14  ;;  %v101_v19 = vrot.slane %v96_v15, %v100_v16  ;;  %v109_v28 = vrot.slane %v96_v15, %v108_v23  ;;  %v265_v37 = vld [vmem:[%s1405_s3] sm:$0x3]  ;;  %s1260_s3 = smov [#allocation7]  }
  0x39   :  { %v266_v38 = vsub.f32 1.0, %v265_v37  ;;  %s955_s19 = sshll.u32 %s1260_s3, 4  ;;  %s956_s19 = int_to_ptr.vmem [resolvable:$true] %s955_s19 }
  0x3a   :  { %1132 = vmatpush3.bf16.msra.mxu1 %v1129_v43  ;;  %s1223_s20 = scalar_lea.vmem %s956_s19, 256  ;;  %p1228_p3 = scmp.lt.s32.totalorder %s956_s19, %s956_s19 }
  0x3b   :  { %1108 = vmatpush1.bf16.msra.mxu0 %v1107_v41  ;;  %1134 = vmatprep.subr.bf16.mxu1 %v1133_v52  ;;  %v267_v39 = vmul.f32 -3.4028235e+38, %v266_v38  ;;  %p1224_p2 = scmp.ne.s32.totalorder %s956_s19, %s1223_s20  ;;  %p1229_p4 = scmp.lt.s32.totalorder %s1223_s20, %s1223_s20 }
  0x3c   :  { %1110 = vmatprep.subr.bf16.mxu0 %v1109_v44 }
  0x3d   :  { %v349_v40 = vrot.slane %v267_v39, %v100_v16  ;;  %p1230_p5 = por %p1229_p4, %p1228_p3 }
  0x3e   :  { %1136 = vmatpush3.bf16.msra.mxu1 %v1133_v52 }
  0x3f   :  { %1112 = vmatpush1.bf16.msra.mxu0 %v1111_v50  ;;  %1138 = vmatprep.subr.bf16.mxu1 %v1137_v61  ;;  %v689_v50 = vrot.slane %v267_v39, %v104_v14  ;;  %p1231_p6 = pnand %p1230_p5, %p1224_p2 }
  0x40   :  { %1114 = vmatprep.subr.bf16.mxu0 %v1113_v53 }
  0x42   :  { %1140 = vmatpush3.bf16.msra.mxu1 %v1137_v61 }
  0x43   :  { %1116 = vmatpush1.bf16.msra.mxu0 %v1115_v59  ;;  %1142 = vmatprep.subr.bf16.mxu1 %v1141_v4 }
  0x44   :  { %1118 = vmatprep.subr.bf16.mxu0 %v1117_v62 }
  0x46   :  { %1144 = vmatpush3.bf16.msra.mxu1 %v1141_v4 }
  0x47   :  { %1120 = vmatpush1.bf16.msra.mxu0 %v1119_v3  ;;  %1146 = vmatprep.subr.bf16.mxu1 %v1145_v7 }
  0x48   :  { %1054 = vmatprep.subr.mxu0 %v1257_v0 }
  0x4a   :  { %178 = vmatmul.mubr.f32.vlgmr.msra.gmra.mrb[0].mxu0 %v1314_v26  ;;  %1148 = vmatpush3.bf16.msra.mxu1 %v1145_v7 }
  0x4b   :  { %183 = vmatprep.mubr.f32.mxu0 %v1257_v0  ;;  %1150 = vmatprep.subr.bf16.mxu1 %v1149_v11 }
  0x4e   :  { %184 = vmatmul.mubr.f32.gmra.mrb[2].mxu0 %v47_v10  ;;  %1152 = vmatpush3.bf16.msra.mxu1 %v1149_v11 }
  0x4f   :  { %1049 = vmatprep.subr.mxu1 %v1257_v0  ;;  %1056 = vmatprep.mubr.msk.f32.mxu0 %vm1258_vm0, %v1257_v0 }
  0x51   :  { %1047 = vmatmul.mubr.f32.vlgmr.msra.gmra.mrb[0].mxu1 %v47_v10 }
  0x52   :  { %1051 = vmatprep.mubr.msk.f32.mxu1 %vm1258_vm0, %v1257_v0 }
 0x11d   :  { %v179_v18 = vpop.f32.mrb[0].mxu0 }
 0x11e   :  { %v181_v20 = vpop.f32.mrb[1].mxu0  ;;  %v180_v24 = vadd.f32 %v179_v18, %v101_v19 }
 0x11f   :  { %v182_v21 = vadd.f32 %v181_v20, %v105_v17 }
 0x121   :  { %v185_v22 = vpop.f32.mrb[2].mxu0  ;;  %438 = vrot.lane.b32.xlu0 %v182_v21, %s1259_s17  ;;  %1050 = vmatpush3.xpose.msk.msra.mxu1 %vm268_vm1, %v182_v21 }
 0x122   :  { %v187_v25 = vpop.f32.mrb[3].mxu0  ;;  %1059 = vmatprep.subr.mxu1 %v1257_v0  ;;  %v186_v27 = vadd.f32 %v185_v22, %v101_v19 }
 0x123   :  { %v188_v26 = vadd.f32 %v187_v25, %v105_v17 }
 0x124   :  { %1052 = vmatmul.mubr.msk.f32.vlgmr.msra.gmra.mrb[2].mxu1 %vm268_vm1, %v180_v24  ;;  %v1048_v29 = vpop.f32.mrb[0].mxu1 }
 0x125   :  { %777 = vrot.lane.b32.xlu1 %v188_v26, %s1259_s17  ;;  %436 = vrot.lane.b32.xlu0 %v180_v24, %s1259_s17  ;;  %v1337_v30 = vadd.f32 %v1048_v29, %v109_v28  ;;  %v256_v31 = vpop.f32.mrb[1].mxu1 }
 0x126   :  { %1061 = vmatprep.mubr.msk.f32.mxu1 %vm1258_vm0, %v1257_v0  ;;  %v1339_v32 = vadd.f32 %v256_v31, %v109_v28 }
 0x128   :  { %1055 = vmatpush3.msra.mxu0 %v1339_v32 }
 0x129   :  { %775 = vrot.lane.b32.xlu1 %v186_v27, %s1259_s17  ;;  %1064 = vmatprep.subr.mxu0 %v1257_v0 }
 0x193   :  { %v439_v33 = vpop.permute.xlu0 %438 }
 0x194   :  { %1060 = vmatpush3.xpose.msk.msra.mxu1 %vm268_vm1, %v439_v33 }
 0x195   :  { %1069 = vmatprep.subr.mxu1 %v1257_v0 }
 0x197   :  { %v437_v34 = vpop.permute.xlu0 %436  ;;  %v778_v35 = vpop.permute.xlu1 %777 }
 0x198   :  { %1062 = vmatmul.mubr.msk.f32.vlgmr.msra.gmra.mrb[4].mxu1 %vm268_vm1, %v437_v34 }
 0x199   :  { %1070 = vmatpush3.xpose.msk.msra.mxu1 %vm268_vm1, %v188_v26  ;;  %1071 = vmatprep.mubr.msk.f32.mxu1 %vm1258_vm0, %v1257_v0 }
 0x19a   :  { %1079 = vmatprep.subr.mxu1 %v1257_v0 }
 0x19b   :  { %v776_v36 = vpop.permute.xlu1 %775 }
 0x19c   :  { %1072 = vmatmul.mubr.msk.f32.vlgmr.msra.gmra.mrb[6].mxu1 %vm268_vm1, %v186_v27 }
 0x19d   :  { %1080 = vmatpush3.xpose.msk.msra.mxu1 %vm268_vm1, %v778_v35  ;;  %1081 = vmatprep.mubr.msk.f32.mxu1 %vm1258_vm0, %v1257_v0 }
 0x1a0   :  { %1082 = vmatmul.mubr.msk.f32.vlgmr.msra.gmra.mrb[8].mxu1 %vm268_vm1, %v776_v36 }
 0x1f7   :  { %v341_v41 = vpop.f32.mrb[2].mxu1 }
 0x1f8   :  { %v345_v42 = vmul.f32 0.125, %v341_v41  ;;  %v1053_v43 = vpop.f32.mrb[3].mxu1 }
 0x1fa   :  { %v350_v44 = vadd.f32 %v349_v40, %v345_v42 }
 0x1fc   :  { %v352_v45 = vsel %vm351_vm2, %v350_v44, -inf }
 0x1fd   :  { %353 = vmax.xlane.f32.xlu0 %v352_v45 }
 0x26b   :  { %v510_v46 = vpop.f32.mrb[4].mxu1 }
 0x26c   :  { %v514_v47 = vmul.f32 0.125, %v510_v46  ;;  %v1063_v48 = vpop.f32.mrb[5].mxu1 }
 0x26e   :  { %v515_v49 = vadd.f32 %v514_v47, %v349_v40 }
 0x26f   :  { %v681_v51 = vpop.f32.mrb[6].mxu1 }
 0x270   :  { %v685_v52 = vmul.f32 0.125, %v681_v51  ;;  %v1073_v53 = vpop.f32.mrb[7].mxu1  ;;  %v516_v54 = vsel %vm351_vm2, %v515_v49, -inf }
 0x271   :  { %517 = vmax.xlane.f32.xlu1 %v516_v54 }
 0x272   :  { %v690_v55 = vadd.f32 %v689_v50, %v685_v52 }
 0x273   :  { %v849_v56 = vpop.f32.mrb[8].mxu1 }
 0x274   :  { %v853_v57 = vmul.f32 0.125, %v849_v56  ;;  %v1083_v58 = vpop.f32.mrb[9].mxu1  ;;  %v691_v59 = vsel %vm351_vm2, %v690_v55, -inf }
 0x275   :  { %692 = vmax.xlane.f32.xlu0 %v691_v59 }
 0x276   :  { %v854_v60 = vadd.f32 %v853_v57, %v689_v50 }
 0x278   :  { %v855_v61 = vsel %vm351_vm2, %v854_v60, -inf }
 0x279   :  { %856 = vmax.xlane.f32.xlu0 %v855_v61 }
 0x28a   :  { %v354_v62 = vpop.xlane.xlu0 %353 }
 0x28b   :  { %v355_v63 = vsub.f32 %v350_v44, %v354_v62 }
 0x28d   :  { %v356_v1 = vmul.f32 1.442695, %v355_v63 }
 0x28f   :  { %1163 = vpow2.f32 %v356_v1 }
 0x299   :  { %v1164_v2 = vpop.eup %1163 }
 0x29a   :  { %v358_v3 = vsel %vm351_vm2, %v1164_v2, 0.0 }
 0x29b   :  { %359 = vadd.xlane.f32.xlu1 %v358_v3 }
 0x2fe   :  { %v518_v4 = vpop.xlane.xlu1 %517 }
 0x2ff   :  { %v519_v5 = vsub.f32 %v515_v49, %v518_v4 }
 0x301   :  { %v520_v6 = vmul.f32 1.442695, %v519_v5 }
 0x302   :  { %v693_v7 = vpop.xlane.xlu0 %692 }
 0x303   :  { %1165 = vpow2.f32 %v520_v6  ;;  %v694_v8 = vsub.f32 %v690_v55, %v693_v7 }
 0x305   :  { %v695_v9 = vmul.f32 1.442695, %v694_v8 }
 0x306   :  { %v857_v10 = vpop.xlane.xlu0 %856 }
 0x307   :  { %1167 = vpow2.f32 %v695_v9  ;;  %v858_v11 = vsub.f32 %v854_v60, %v857_v10 }
 0x309   :  { %v859_v12 = vmul.f32 1.442695, %v858_v11 }
 0x30b   :  { %1169 = vpow2.f32 %v859_v12 }
 0x30d   :  { %v1166_v13 = vpop.eup %1165 }
 0x30e   :  { %v522_v14 = vsel %vm351_vm2, %v1166_v13, 0.0 }
 0x30f   :  { %523 = vadd.xlane.f32.xlu0 %v522_v14 }
 0x311   :  { %v1168_v15 = vpop.eup %1167 }
 0x312   :  { %v697_v16 = vsel %vm351_vm2, %v1168_v15, 0.0 }
 0x313   :  { %698 = vadd.xlane.f32.xlu1 %v697_v16 }
 0x315   :  { %v1170_v17 = vpop.eup %1169 }
 0x316   :  { %v861_v18 = vsel %vm351_vm2, %v1170_v17, 0.0 }
 0x317   :  { %862 = vadd.xlane.f32.xlu0 %v861_v18 }
 0x324   :  { %528 = vrot.lane.b32.xlu1 %v1339_v32, %s1259_s17 }
 0x328   :  { %v360_v19 = vpop.xlane.xlu1 %359 }
 0x329   :  { %1171 = vrcp.f32 %v360_v19 }
 0x32d   :  { %867 = vrot.lane.b32.xlu0 %v1337_v30, %s1259_s17 }
 0x333   :  { %v1172_v20 = vpop.eup %1171 }
 0x334   :  { %v362_v21 = vmul.f32 %v1172_v20, %v1164_v2 }
 0x336   :  { %1057 = vmatmul.mubr.msk.f32.vlgmr.msra.gmra.mrb[4].mxu0 %vm351_vm2, %v362_v21 }
 0x337   :  { %1066 = vmatprep.mubr.msk.f32.mxu0 %vm1258_vm0, %v1257_v0 }
 0x39c   :  { %v524_v22 = vpop.xlane.xlu0 %523 }
 0x39d   :  { %1173 = vrcp.f32 %v524_v22 }
 0x3a0   :  { %v699_v23 = vpop.xlane.xlu1 %698 }
 0x3a1   :  { %1175 = vrcp.f32 %v699_v23 }
 0x3a4   :  { %v529_v24 = vpop.permute.xlu1 %528  ;;  %v863_v25 = vpop.xlane.xlu0 %862 }
 0x3a5   :  { %1177 = vrcp.f32 %v863_v25  ;;  %1065 = vmatpush3.msra.mxu0 %v529_v24 }
 0x3a6   :  { %1074 = vmatprep.subr.mxu0 %v1257_v0 }
 0x3a7   :  { %v1174_v26 = vpop.eup %1173 }
 0x3a8   :  { %v526_v27 = vmul.f32 %v1174_v26, %v1166_v13  ;;  %v868_v31 = vpop.permute.xlu0 %867 }
 0x3aa   :  { %1067 = vmatmul.mubr.msk.f32.vlgmr.msra.gmra.mrb[6].mxu0 %vm351_vm2, %v526_v27 }
 0x3ab   :  { %v1176_v28 = vpop.eup %1175  ;;  %1075 = vmatpush3.msra.mxu0 %v1337_v30  ;;  %1076 = vmatprep.mubr.msk.f32.mxu0 %vm1258_vm0, %v1257_v0 }
 0x3ac   :  { %v701_v29 = vmul.f32 %v1176_v28, %v1168_v15  ;;  %1084 = vmatprep.subr.mxu0 %v1257_v0 }
 0x3ae   :  { %1077 = vmatmul.mubr.msk.f32.vlgmr.msra.gmra.mrb[8].mxu0 %vm351_vm2, %v701_v29 }
 0x3af   :  { %v1178_v32 = vpop.eup %1177  ;;  %1085 = vmatpush3.msra.mxu0 %v868_v31  ;;  %1086 = vmatprep.mubr.msk.f32.mxu0 %vm1258_vm0, %v1257_v0 }
 0x3b0   :  { %v865_v33 = vmul.f32 %v1178_v32, %v1170_v17 }
 0x3b2   :  { %1087 = vmatmul.mubr.msk.f32.vlgmr.msra.gmra.mrb[10].mxu0 %vm351_vm2, %v865_v33 }
 0x409   :  { %v432_v34 = vpop.f32.mrb[4].mxu0 }
 0x40a   :  { %v1058_v35 = vpop.f32.mrb[5].mxu0 }
 0x47d   :  { %v600_v30 = vpop.f32.mrb[6].mxu0 }
 0x47e   :  { %605 = vrot.lane.b32.xlu1 %v600_v30, %s1259_s17  ;;  %v1068_v36 = vpop.f32.mrb[7].mxu0 }
 0x481   :  { %v771_v37 = vpop.f32.mrb[8].mxu0 }
 0x482   :  { %v1078_v38 = vpop.f32.mrb[9].mxu0 }
 0x485   :  { %v939_v39 = vpop.f32.mrb[10].mxu0 }
 0x486   :  { %944 = vrot.lane.b32.xlu1 %v939_v39, %s1259_s17  ;;  %v1088_v40 = vpop.f32.mrb[11].mxu0 }
 0x4f0   :  { %v606_v41 = vpop.permute.xlu1 %605 }
 0x4f1   :  { %v608_v42 = vsel %vm268_vm1, %v432_v34, %v606_v41 }
 0x4f2   :  { %948 = vst [vmem:[#allocation7] sm:$0xff] %v608_v42 }
 0x4f8   :  { %v945_v0 = vpop.permute.xlu1 %944 }
 0x4f9   :  { %v947_v43 = vsel %vm268_vm1, %v771_v37, %v945_v0 }
 0x4fa   :  { %949 = vst [vmem:[#allocation7 + $0x8] sm:$0xff] %v947_v43 }
 0x4fb   :  { %1234 = shalt.err (!%p1231_p6)
}
 0x4fc   :  { %s1235_s23 = scalar_lea.hbm %s1406_s4, 256 }
 0x4fd   :  { %p1236_p7 = scmp.ne.s32.totalorder %s1406_s4, %s1235_s23  ;;  %p1239_p8 = scmp.lt.u32.totalorder %s1235_s23, %s1406_s4 }
 0x4ff   :  { %p1241_p9 = pnand %p1239_p8, %p1236_p7 }
 0x501   :  { %1244 = shalt.err (!%p1241_p9)
}
 0x502   :  { %961 = dma.vmem_to_hbm [thread:$0]  %s956_s19, 256, %s1406_s4, [#allocation4], %s1252_s25, %s1252_s25, %s1253_s26  }
 0x503   :  { %1249 = dma.done.wait [#allocation4], 256  }
 0x504   :  { %1250 = vsyncadd [#allocation4], 4294967040 }
 0x505   :  { %965 = vsyncpa [#allocation3], 1 }
 0x506   :  { %966 = vsyncpa [#allocation6], 1 }
 0x507   :  { %967 = vsyncpa [#allocation4], 1 }

</bundles_post_ra>
